<compile_context>
chip_gen: v5e
topology: v5e:2x2
jax: 0.10.0
libtpu: 0.0.40
codegen_flags: <defaults>
</compile_context>

<pallas_src>
import functools
import math

import jax
import jax.numpy as jnp
from jax import lax
from jax.experimental import pallas as pl
from jax.experimental.pallas import tpu as pltpu

_EPS = 1e-8


def _metric_kernel_small(x_ref, w_ref, wn_ref, o_ref, *, scaler):
    """Small-C / small-n_out path: VPU broadcast-FMA, weights as SMEM scalars.

    x_ref : (1, C, t_hw)   VMEM tile of pixels (spatial on lanes)
    w_ref : (n_out, C)     f32 prototypes in SMEM (scalar reads)
    wn_ref: (n_out,)       f32 prototype norms in SMEM (precomputed)
    o_ref : (1, n_out, t_hw) VMEM output tile (lane-dense on spatial)
    """
    C = x_ref.shape[1]
    n_out = o_ref.shape[1]

    x = x_ref[0].astype(jnp.float32)                              # (C, t_hw)
    x_norm = jnp.sqrt(jnp.sum(x * x, axis=0, keepdims=True))      # (1, t_hw)

    rows = []
    for k in range(n_out):
        # out[k, :] = sum_c w[k, c] * x[c, :]   (scalar-broadcast FMAs on VPU)
        dot_k = x[0:1, :] * w_ref[k, 0]
        for c in range(1, C):
            dot_k = dot_k + x[c:c + 1, :] * w_ref[k, c]
        denom = jnp.maximum(x_norm * wn_ref[k], _EPS)             # (1, t_hw)
        rows.append(dot_k / denom)

    out = jnp.concatenate(rows, axis=0)                           # (n_out, t_hw)
    if scaler != 1.0:
        out = out * scaler
    o_ref[0] = out.astype(o_ref.dtype)


def _metric_kernel_mxu(x_ref, w_ref, wn_ref, o_ref, *, scaler):
    """Fallback for large C / n_out: MXU dot over the channel axis.

    x_ref : (1, C, t_hw) VMEM, w_ref: (n_out, C) VMEM, wn_ref: (n_out, 1) VMEM.
    """
    x = x_ref[0].astype(jnp.float32)                              # (C, t_hw)
    w = w_ref[...].astype(jnp.float32)                            # (n_out, C)
    wn = wn_ref[...].astype(jnp.float32)                          # (n_out, 1)

    dot = lax.dot_general(
        w, x,
        dimension_numbers=(((1,), (0,)), ((), ())),
        preferred_element_type=jnp.float32,
    )                                                             # (n_out, t_hw)

    x_norm = jnp.sqrt(jnp.sum(x * x, axis=0, keepdims=True))      # (1, t_hw)
    denom = jnp.maximum(wn * x_norm, _EPS)                        # (n_out, t_hw)
    out = dot / denom
    if scaler != 1.0:
        out = out * scaler
    o_ref[0] = out.astype(o_ref.dtype)


def _pick_tile_hw(HW, C, n_out, target=4096):
    """Spatial tile: as large as possible (amortize per-step overhead) while
    keeping double-buffered in+out tiles well under the scoped-VMEM default,
    which is the binding limit on v7x (64 MiB VMEM / 32 MiB scoped)."""
    budget = 12 << 20                                  # bytes, conservative
    cap = budget // (8 * (C + n_out))                  # 2 bufs * 4 B * (in+out)
    cap = max(128, (cap // 128) * 128)
    t = min(target, cap)
    if HW <= t:
        return HW                                      # full dim: always legal
    return max(128, (t // 128) * 128)                  # lane-aligned tile


def metric_layer_pallas(x_nchw, weight, *, scaler=1.0, tile_hw=4096):
    """Cosine metric head.  x_nchw: (N, C, H, W), weight: (n_out, C).
    Returns (N, n_out, H, W)."""
    N, C, H, W = x_nchw.shape
    n_out = weight.shape[0]
    HW = H * W

    t = _pick_tile_hw(HW, C, n_out, target=tile_hw)
    grid = (N, pl.cdiv(HW, t))

    # Free view reshape: NCHW -> (N, C, HW). No transpose, no pad, no copy.
    x3d = x_nchw.reshape(N, C, HW)

    # Prototype norms hoisted out of the grid (n_out scalars).
    w_f32 = weight.astype(jnp.float32)
    wn = jnp.sqrt(jnp.sum(w_f32 * w_f32, axis=1))      # (n_out,)

    x_spec = pl.BlockSpec((1, C, t), lambda n, j: (n, 0, j))
    o_spec = pl.BlockSpec((1, n_out, t), lambda n, j: (n, 0, j))

    small = (C <= 16) and (n_out <= 8)
    if small:
        kernel = functools.partial(_metric_kernel_small, scaler=float(scaler))
        extra_inputs = (w_f32, wn)
        extra_specs = [
            pl.BlockSpec(memory_space=pltpu.MemorySpace.SMEM),   # weight scalars
            pl.BlockSpec(memory_space=pltpu.MemorySpace.SMEM),   # prototype norms
        ]
    else:
        kernel = functools.partial(_metric_kernel_mxu, scaler=float(scaler))
        extra_inputs = (w_f32, wn.reshape(n_out, 1))
        extra_specs = [
            pl.BlockSpec((n_out, C), lambda n, j: (0, 0)),
            pl.BlockSpec((n_out, 1), lambda n, j: (0, 0)),
        ]

    out3d = pl.pallas_call(
        kernel,
        out_shape=jax.ShapeDtypeStruct((N, n_out, HW), x_nchw.dtype),
        grid_spec=pltpu.PrefetchScalarGridSpec(
            num_scalar_prefetch=0,
            grid=grid,
            in_specs=[x_spec] + extra_specs,
            out_specs=o_spec,
        ),
        compiler_params=pltpu.CompilerParams(
            # Both grid axes are independent -> megacore sharding on v7x.
            dimension_semantics=("parallel", "parallel"),
        ),
    )(x3d, *extra_inputs)

    # Free view reshape back to NCHW.
    return out3d.reshape(N, n_out, H, W)


def _xavier_uniform(key, n_out, n_in, dtype=jnp.float32):
    # torch.nn.init.xavier_uniform_ with gain=1.0
    bound = math.sqrt(6.0 / (n_in + n_out))
    return jax.random.uniform(key, (n_out, n_in), dtype, minval=-bound, maxval=bound)


def _reference(x_nchw, weight, scaler=1.0):
    # Plain-JAX reference mirroring torch.nn.functional.cosine_similarity,
    # computed with exact fp32 elementwise math (no MXU rounding).
    x = x_nchw.astype(jnp.float32)
    w = weight.astype(jnp.float32)
    dot = jnp.sum(x[:, None, :, :, :] * w[None, :, :, None, None], axis=2)
    xn = jnp.sqrt(jnp.sum(x * x, axis=1, keepdims=True))          # (N,1,H,W)
    wn = jnp.sqrt(jnp.sum(w * w, axis=1))                         # (n_out,)
    denom = jnp.maximum(xn * wn[None, :, None, None], _EPS)
    return dot / denom * scaler


if __name__ == "__main__":
    key = jax.random.PRNGKey(0)
    k_x, k_w = jax.random.split(key)

    N, C, H, W = 2, 4, 16, 16
    n_out = 2

    x = jax.random.normal(k_x, (N, C, H, W), dtype=jnp.float32)
    weight = _xavier_uniform(k_w, n_out, C)

    out = metric_layer_pallas(x, weight)
    out = jax.block_until_ready(out)

    ref = _reference(x, weight)
    assert out.shape == (N, n_out, H, W)
    assert jnp.allclose(out, ref, atol=1e-5, rtol=1e-5), float(
        jnp.max(jnp.abs(out - ref)))

    print("KERNEL_OK")
</pallas_src>

<mosaic_0001>
module attributes {stable_mosaic.version = 11 : i64} {
  func.func @_metric_kernel_small(%arg0: i32, %arg1: i32, %arg2: memref<1x4x256xf32, #tpu.memory_space<vmem>>, %arg3: memref<2x4xf32, #tpu.memory_space<smem>>, %arg4: memref<2xf32, #tpu.memory_space<smem>>, %arg5: memref<1x2x256xf32, #tpu.memory_space<vmem>>) attributes {dimension_semantics = [#tpu.dimension_semantics<parallel>, #tpu.dimension_semantics<parallel>], iteration_bounds = array<i64: 2, 1>, scalar_prefetch = 0 : i64, scratch_operands = 0 : i64, tpu.core_type = #tpu.core_type<tc>, window_params = [{transform_indices = @transform_0, window_bounds = array<i64: 1, 4, 256>}, {transform_indices = @transform_1, window_bounds = array<i64: 2, 4>}, {transform_indices = @transform_2, window_bounds = array<i64: 2>}, {transform_indices = @transform_3, window_bounds = array<i64: 1, 2, 256>}]} {
    %c0 = arith.constant 0 : index
    %c0_0 = arith.constant 0 : index
    %c0_1 = arith.constant 0 : index
    %0 = vector.load %arg2[%c0, %c0_0, %c0_1] : memref<1x4x256xf32, #tpu.memory_space<vmem>>, vector<1x4x256xf32>
    %1 = vector.shape_cast %0 : vector<1x4x256xf32> to vector<4x256xf32>
    %2 = arith.mulf %1, %1 : vector<4x256xf32>
    %cst = arith.constant dense<0.000000e+00> : vector<256xf32>
    %3 = vector.multi_reduction <add>, %2, %cst [0] : vector<4x256xf32> to vector<256xf32>
    %4 = vector.shape_cast %3 : vector<256xf32> to vector<1x256xf32>
    %5 = math.sqrt %4 : vector<1x256xf32>
    %6 = vector.extract_strided_slice %1 {offsets = [0, 0], sizes = [1, 256], strides = [1, 1]} : vector<4x256xf32> to vector<1x256xf32>
    %c0_2 = arith.constant 0 : index
    %c0_3 = arith.constant 0 : index
    %7 = memref.load %arg3[%c0_2, %c0_3] : memref<2x4xf32, #tpu.memory_space<smem>>
    %8 = vector.broadcast %7 : f32 to vector<1x256xf32>
    %9 = arith.mulf %6, %8 : vector<1x256xf32>
    %10 = vector.extract_strided_slice %1 {offsets = [1, 0], sizes = [1, 256], strides = [1, 1]} : vector<4x256xf32> to vector<1x256xf32>
    %c0_4 = arith.constant 0 : index
    %c1 = arith.constant 1 : index
    %11 = memref.load %arg3[%c0_4, %c1] : memref<2x4xf32, #tpu.memory_space<smem>>
    %12 = vector.broadcast %11 : f32 to vector<1x256xf32>
    %13 = arith.mulf %10, %12 : vector<1x256xf32>
    %14 = arith.addf %9, %13 : vector<1x256xf32>
    %15 = vector.extract_strided_slice %1 {offsets = [2, 0], sizes = [1, 256], strides = [1, 1]} : vector<4x256xf32> to vector<1x256xf32>
    %c0_5 = arith.constant 0 : index
    %c2 = arith.constant 2 : index
    %16 = memref.load %arg3[%c0_5, %c2] : memref<2x4xf32, #tpu.memory_space<smem>>
    %17 = vector.broadcast %16 : f32 to vector<1x256xf32>
    %18 = arith.mulf %15, %17 : vector<1x256xf32>
    %19 = arith.addf %14, %18 : vector<1x256xf32>
    %20 = vector.extract_strided_slice %1 {offsets = [3, 0], sizes = [1, 256], strides = [1, 1]} : vector<4x256xf32> to vector<1x256xf32>
    %c0_6 = arith.constant 0 : index
    %c3 = arith.constant 3 : index
    %21 = memref.load %arg3[%c0_6, %c3] : memref<2x4xf32, #tpu.memory_space<smem>>
    %22 = vector.broadcast %21 : f32 to vector<1x256xf32>
    %23 = arith.mulf %20, %22 : vector<1x256xf32>
    %24 = arith.addf %19, %23 : vector<1x256xf32>
    %c0_7 = arith.constant 0 : index
    %25 = memref.load %arg4[%c0_7] : memref<2xf32, #tpu.memory_space<smem>>
    %26 = vector.broadcast %25 : f32 to vector<1x256xf32>
    %27 = arith.mulf %5, %26 : vector<1x256xf32>
    %cst_8 = arith.constant 9.99999993E-9 : f32
    %28 = vector.broadcast %cst_8 : f32 to vector<1x256xf32>
    %29 = arith.maximumf %27, %28 : vector<1x256xf32>
    %30 = arith.divf %24, %29 : vector<1x256xf32>
    %31 = vector.extract_strided_slice %1 {offsets = [0, 0], sizes = [1, 256], strides = [1, 1]} : vector<4x256xf32> to vector<1x256xf32>
    %c1_9 = arith.constant 1 : index
    %c0_10 = arith.constant 0 : index
    %32 = memref.load %arg3[%c1_9, %c0_10] : memref<2x4xf32, #tpu.memory_space<smem>>
    %33 = vector.broadcast %32 : f32 to vector<1x256xf32>
    %34 = arith.mulf %31, %33 : vector<1x256xf32>
    %35 = vector.extract_strided_slice %1 {offsets = [1, 0], sizes = [1, 256], strides = [1, 1]} : vector<4x256xf32> to vector<1x256xf32>
    %c1_11 = arith.constant 1 : index
    %c1_12 = arith.constant 1 : index
    %36 = memref.load %arg3[%c1_11, %c1_12] : memref<2x4xf32, #tpu.memory_space<smem>>
    %37 = vector.broadcast %36 : f32 to vector<1x256xf32>
    %38 = arith.mulf %35, %37 : vector<1x256xf32>
    %39 = arith.addf %34, %38 : vector<1x256xf32>
    %40 = vector.extract_strided_slice %1 {offsets = [2, 0], sizes = [1, 256], strides = [1, 1]} : vector<4x256xf32> to vector<1x256xf32>
    %c1_13 = arith.constant 1 : index
    %c2_14 = arith.constant 2 : index
    %41 = memref.load %arg3[%c1_13, %c2_14] : memref<2x4xf32, #tpu.memory_space<smem>>
    %42 = vector.broadcast %41 : f32 to vector<1x256xf32>
    %43 = arith.mulf %40, %42 : vector<1x256xf32>
    %44 = arith.addf %39, %43 : vector<1x256xf32>
    %45 = vector.extract_strided_slice %1 {offsets = [3, 0], sizes = [1, 256], strides = [1, 1]} : vector<4x256xf32> to vector<1x256xf32>
    %c1_15 = arith.constant 1 : index
    %c3_16 = arith.constant 3 : index
    %46 = memref.load %arg3[%c1_15, %c3_16] : memref<2x4xf32, #tpu.memory_space<smem>>
    %47 = vector.broadcast %46 : f32 to vector<1x256xf32>
    %48 = arith.mulf %45, %47 : vector<1x256xf32>
    %49 = arith.addf %44, %48 : vector<1x256xf32>
    %c1_17 = arith.constant 1 : index
    %50 = memref.load %arg4[%c1_17] : memref<2xf32, #tpu.memory_space<smem>>
    %51 = vector.broadcast %50 : f32 to vector<1x256xf32>
    %52 = arith.mulf %5, %51 : vector<1x256xf32>
    %cst_18 = arith.constant 9.99999993E-9 : f32
    %53 = vector.broadcast %cst_18 : f32 to vector<1x256xf32>
    %54 = arith.maximumf %52, %53 : vector<1x256xf32>
    %55 = arith.divf %49, %54 : vector<1x256xf32>
    %56 = tpu.concatenate %30, %55 in 0 : vector<1x256xf32>, vector<1x256xf32> -> vector<2x256xf32>
    %c0_19 = arith.constant 0 : index
    %c0_20 = arith.constant 0 : index
    %c0_21 = arith.constant 0 : index
    %57 = vector.load %arg5[%c0_19, %c0_20, %c0_21] : memref<1x2x256xf32, #tpu.memory_space<vmem>>, vector<1x2x256xf32>
    %58 = vector.shape_cast %57 : vector<1x2x256xf32> to vector<2x256xf32>
    %59 = vector.shape_cast %56 : vector<2x256xf32> to vector<1x2x256xf32>
    tpu.vector_store %arg5[%c0_19, %c0_20, %c0_21], %59 {strides = array<i32>} : memref<1x2x256xf32, #tpu.memory_space<vmem>>, vector<1x2x256xf32>,
    return
  }
  func.func @transform_0(%arg0: i32, %arg1: i32) -> (i32, i32, i32) {
    %c0_i32 = arith.constant 0 : i32
    %c0_i32_0 = arith.constant 0 : i32
    return %arg0, %c0_i32, %arg1 : i32, i32, i32
  }
  func.func @transform_1(%arg0: i32, %arg1: i32) -> (i32, i32) {
    %c0_i32 = arith.constant 0 : i32
    %c0_i32_0 = arith.constant 0 : i32
    %c0_i32_1 = arith.constant 0 : i32
    return %c0_i32, %c0_i32_0 : i32, i32
  }
  func.func @transform_2(%arg0: i32, %arg1: i32) -> i32 {
    %c0_i32 = arith.constant 0 : i32
    %c0_i32_0 = arith.constant 0 : i32
    return %c0_i32 : i32
  }
  func.func @transform_3(%arg0: i32, %arg1: i32) -> (i32, i32, i32) {
    %c0_i32 = arith.constant 0 : i32
    %c0_i32_0 = arith.constant 0 : i32
    return %arg0, %c0_i32, %arg1 : i32, i32, i32
  }
}

</mosaic_0001>

<bundles_post_ra>
// kernel: tpu_custom_call.1
= control target key start
LH: loop header
LB: loop body
LE: loop exit
PB: predicated region body
PF: predicated region fallthrough
CT: control target
= control target key end

     0   :  { %8 = vsyncpa [#allocation3], 0  ;;  %s1023_s0 = inlined_call_operand.hbm [shape: f32[2,4,256], index: 0, kind: input, shape index: {}]   ;;  %s1024_s1 = inlined_call_operand.hbm [shape: f32[2,4], index: 1, kind: input, shape index: {}]   ;;  %s1025_s2 = inlined_call_operand.vmem [shape: f32[2], index: 2, kind: input, shape index: {}]   ;;  %s1026_s3 = inlined_call_operand.hbm [shape: f32[2,2,256], index: 3, kind: output, shape index: {}]  }
   0x1   :  { %10 = vsyncpa [#allocation3 + $0x1], 0 }
   0x2   :  { %11 = vsyncpa [#allocation5], 0 }
   0x3   :  { %12 = vsyncpa [#allocation6], 0 }
   0x4   :  { %13 = vsyncpa [#allocation4], 0 }
   0x5   :  { %15 = vsyncpa [#allocation4 + $0x1], 0  ;;  %s836_s12 = smov 0   ;;  %s838_s13 = smov 0  }
   0x6   :  { %s840_s14 = smov 0   ;;  %s842_s15 = smov 0  }
   0x7   :  { %s844_s16 = smov 0   ;;  %s846_s17 = smov 0  }
   0x8 LB: > { %s536_s18 = sadd.s32 4294967295, %s812_s17   ;;  %s537_s19 = sadd.s32 4294967294, %s812_s17   ;;  %s812_s17 = sphi %s846_s17, %s21_s17   ;;  %s808_s16 = sphi %s844_s16, %s1036_s16   ;;  %s804_s15 = sphi %s842_s15, %s1035_s15   ;;  %s800_s14 = sphi %s840_s14, %s1034_s14   ;;  %s796_s13 = sphi %s838_s13, %s1033_s13   ;;  %s792_s12 = sphi %s836_s12, %s1032_s12  }
   0x9   : > { %p55_p0 = scmp.ne.s32.totalorder %s796_s13, %s792_s12  ;;  %p870_p1 = scmp.eq.s32.totalorder %s536_s18, 0 }
   0xa   : > { %p129_p2 = scmp.eq.s32.totalorder %s537_s19, 1  ;;  %p538_p4 = scmp.ge.s32.totalorder %s812_s17, 1 }
   0xb   : > { %p876_p3 = por %p870_p1, %p55_p0  ;;  %p136_p6 = scmp.lt.s32.totalorder %s812_s17, 3 }
   0xc   : > { %p881_p5 = por %p129_p2, %p55_p0  ;;  %s148_s25 = sshll.u32 %s1024_s1, 4  ;;  %s149_s25 = int_to_ptr.hbm [resolvable:$true] %s148_s25 }
   0xd   : > { %p889_p7 = pnand %p538_p4, %p136_p6  ;;  %p541_p8 = scmp.ge.s32.totalorder %s812_s17, 2 }
   0xe   : > { %s158_s29 = sshll.u32 %s1025_s2, 4  ;;  %s814_s30 = smov [#allocation7]   ;;  %s159_s29 = int_to_ptr.vmem [resolvable:$true] %s158_s29 }
   0xf   : > { %p583_p9 = pneg %p889_p7  ;;  %s815_s4 = smov [#allocation8]  }
  0x10   : > { %p123_p11 = scmp.eq.s32.totalorder %s536_s18, 1  ;;  %s33_s5 = sadd.s32 1, %s808_s16 }
  0x11   : > { %p584_p10 = pnand %p583_p9, %p870_p1  ;;  %p35_p12 = scmp.ge.s32.totalorder %s33_s5, 2 }
  0x12   : > { %s42_s6 = sadd.s32 1, %s800_s14  ;;  %p49_p13 = scmp.ne.s32.totalorder %s800_s14, %s796_s13 }
  0x13   : > { %586 = dma.hbm_to_smem (!%p584_p10), %s149_s25, 32, %s814_s30, [#allocation5]  }
  0x14   : > { %589 = dma.vmem_to_smem (!%p584_p10), %s159_s29, 16, %s815_s4, [#allocation6]  }
  0x15   : > { %p50_p0 = scmp.eq.s32.totalorder %s812_s17, 0  ;;  %s1038_s5 = smov (%p35_p12, %s33_s5), 0 }
  0x16   : > { %p908_p2 = por %p123_p11, %p49_p13  ;;  %p600_p4 = scmp.lt.s32.totalorder %s812_s17, 2 }
  0x17   : > { %s37_s8 = ssub.s32 %s808_s16, %s1038_s5  ;;  %s169_s9 = sand.u32 1, %s800_s14  }
  0x18   : > { %p40_p6 = scmp.eq.s32.totalorder %s37_s8, 0  ;;  %p51_p9 = por %p50_p0, %p49_p13 }
  0x19   : > { %s542_s10 = sshll.u32 %s169_s9, 3  ;;  %s569_s11 = sshll.u32 %s808_s16, 3 }
  0x1a   : > { %s918_s18 = scalar_select %p40_p6, %s800_s14, %s42_s6  }
  0x1b   : > { %s180_s24 = scalar_lea.hbm %s1023_s0, %s569_s11  ;;  %s173_s27 = scalar_lea.vmem [#allocation2], %s542_s10 }
  0x1c   : > { %s182_s25 = sshll.u32 %s180_s24, 4  ;;  %s184_s28 = sshll.u32 %s173_s27, 4  ;;  %s183_s25 = int_to_ptr.hbm [resolvable:$true] %s182_s25  ;;  %s185_s28 = int_to_ptr.vmem [resolvable:$true] %s184_s28 }
  0x1d   : > { %p591_p10 = pnand %p600_p4, %p51_p9  ;;  %s170_s29 = scalar_lea.sflag [#allocation3], %s169_s9 }
  0x1e   : > { %193 = sbr.rel (%p889_p7) target bundleno = 124 (0x7c), region = 32  ;;  %s928_s30 = sand.u32 (!%p889_p7), 1, %s796_s13  }
  0x1f   : > { %593 = dma.hbm_to_vmem [thread:$0]  (!%p591_p10), %s183_s25, 128, %s185_s28, %s170_s29  }
  0x20   : > { %s546_s4 = sshll.u32 (!%p889_p7), %s928_s30, 3  ;;  %s196_s6 = scalar_lea.sflag (!%p889_p7), [#allocation3], %s928_s30 }
  0x21   : > { %s199_s8 = scalar_lea.vmem (!%p889_p7), [#allocation2], %s546_s4 }
  0x23   : > { %775 = dma.done.wait (%p876_p3), %s196_s6, 128  }
  0x24   : > { %777 = vsyncadd (%p876_p3), %s196_s6, 4294967168 }
  0x25   : > { %779 = dma.done.wait (%p870_p1), [#allocation5], 32  }
  0x26   : > { %781 = vsyncadd (%p870_p1), [#allocation5], 4294967264 }
  0x27   : > { %783 = dma.done.wait (%p870_p1), [#allocation6], 16  }
  0x28   : > { %785 = vsyncadd (%p870_p1), [#allocation6], 4294967280 }
  0x29   : > { %215 = sfence }
  0x2a   : > { %v944_v0 = vld [vmem:[%s199_s8] sm:$0xff]  ;;  %vm244_vm0 = vcmask 1043456   ;;  %s950_s20 = sld [smem:[#allocation8]]  ;;  %s549_s27 = sshll.u32 %s928_s30, 2  ;;  %vm399_vm13 = vcmask 1040384   ;;  %vm405_vm14 = vcmask 1041408  }
  0x2b   : > { %v237_v1 = vmul.f32 %v944_v0, %v944_v0  ;;  %s952_s21 = sld [smem:[#allocation8 + $0x1]]  ;;  %s570_s28 = sshll.u32 %s804_s15, 2 }
  0x2c   : > { %s954_s26 = sld [smem:[#allocation7 + $0x1]]  ;;  %s423_s6 = scalar_lea.hbm %s1026_s3, %s570_s28 }
  0x2d   : > { %239 = vst [vmem:[#allocation1] ss:$2 sm:$0xff] %v237_v1  ;;  %s956_s9 = sld [smem:[#allocation7 + $0x81]]  ;;  %s233_s8 = scalar_lea.vmem [#allocation9], %s549_s27 }
  0x2e   : > { %s958_s10 = sld [smem:[#allocation7]]  ;;  %s427_s15 = sshll.u32 %s423_s6, 4  ;;  %s428_s15 = int_to_ptr.hbm [resolvable:$true] %s427_s15 }
  0x2f   : > { %s961_s11 = sld [smem:[#allocation7 + $0x2]] }
  0x30   : > { %v311_v31 = vstv %s950_s20  ;;  %s964_s19 = sld [smem:[#allocation7 + $0x80]]  ;;  %s425_s20 = sshll.u32 %s233_s8, 4  ;;  %s426_s20 = int_to_ptr.vmem [resolvable:$true] %s425_s20 }
  0x31   : > { %v364_v34 = vstv %s952_s21  ;;  %s966_s23 = sld [smem:[#allocation7 + $0x82]]  ;;  %s410_s21 = scalar_lea.sflag [#allocation4], %s928_s30 }
  0x32   : > { %v287_v40 = vstv %s954_s26  ;;  %s554_s24 = sld [smem:[#allocation7 + $0x3]]  ;;  %s736_s26 = sshra.s32 %s428_s15, 4  ;;  %s737_s26 = int_to_ptr.hbm [resolvable:$true] %s736_s26 }
  0x33   : > { %v340_v46 = vstv %s956_s9  ;;  %s561_s25 = sld [smem:[#allocation7 + $0x83]]  ;;  %v288_v48 = vmul.f32 %v287_v40, %v944_v0  ;;  %s738_s9 = scalar_lea.hbm %s737_s26, 4 }
  0x34   : > { %v240_v2 = vld.sshfl [vmem:[#allocation1] sm:$0xff pattern:$0x75316420]  ;;  %v241_v3 = vld.sshfl [vmem:[#allocation1 + $0x8] sm:$0xff pattern:$0x75316420]  ;;  %v284_v53 = vstv %s958_s10  ;;  %v341_v55 = vmul.f32 %v340_v46, %v944_v0  ;;  %p739_p1 = scmp.ne.s32.totalorder %s737_s26, %s738_s9  ;;  %p743_p11 = scmp.lt.s32.totalorder %s737_s26, %s1026_s3 }
  0x35   : > { %v245_v4 = vsel %vm244_vm0, %v240_v2, 0.0  ;;  %v252_v5 = vsel %vm244_vm0, %v241_v3, 0.0  ;;  %v295_v54 = vstv %s961_s11  ;;  %v285_v60 = vmul.f32 %v284_v53, %v944_v0 }
  0x36   : > { %v246_v6 = vrot.slane %v245_v4, 4  ;;  %v253_v7 = vrot.slane %v252_v5, 4  ;;  %v337_v57 = vstv %s964_s19  ;;  %v551_v61 = vrot.slane %v288_v48, 9  ;;  %p740_p3 = pnand %p739_p1, %p908_p2  ;;  %s742_s19 = scalar_lea.hbm %s1026_s3, 8 }
  0x37   : > { %v348_v58 = vstv %s966_s23  ;;  %v296_v62 = vmul.f32 %v295_v54, %v944_v0  ;;  %v338_v1 = vmul.f32 %v337_v57, %v944_v0  ;;  %v558_v2 = vrot.slane %v341_v55, 9  ;;  %p744_p12 = scmp.lt.s32.totalorder %s742_s19, %s738_s9 }
  0x38   : > { %v247_v8 = vadd.f32 %v246_v6, %v245_v4  ;;  %v254_v9 = vadd.f32 %v253_v7, %v252_v5  ;;  %v303_v63 = vstv %s554_s24  ;;  %v349_v3 = vmul.f32 %v348_v58, %v944_v0  ;;  %p741_p7 = pneg %p740_p3 }
  0x39   : > { %v356_v4 = vstv %s561_s25  ;;  %v293_v5 = vadd.f32 %v551_v61, %v285_v60  ;;  %v553_v6 = vrot.slane %v296_v62, 10  ;;  %v304_v7 = vmul.f32 %v303_v63, %v944_v0  ;;  %p745_p13 = por %p744_p12, %p743_p11 }
  0x3a   : > { %v248_v10 = vrot.slane %v247_v8, 2  ;;  %v255_v11 = vrot.slane %v254_v9, 2 }
  0x3b   : > { %p746_p0 = pnand %p745_p13, %p741_p7 }
  0x3c   : > { %v249_v12 = vadd.f32 %v248_v10, %v247_v8  ;;  %v256_v13 = vadd.f32 %v255_v11, %v254_v9  ;;  %v346_v9 = vadd.f32 %v558_v2, %v338_v1  ;;  %v560_v10 = vrot.slane %v349_v3, 10 }
  0x3d   : > { %v357_v11 = vmul.f32 %v356_v4, %v944_v0 }
  0x3e   : > { %v250_v14 = vrot.slane %v249_v12, 1  ;;  %v257_v15 = vrot.slane %v256_v13, 1 }
  0x40   : > { %v251_v16 = vadd.f32 %v250_v14, %v249_v12  ;;  %v258_v17 = vadd.f32 %v257_v15, %v256_v13  ;;  %v301_v15 = vadd.f32 %v553_v6, %v293_v5 }
  0x42   : > { %654 = vrsqrt.f32 %v251_v16  ;;  %vm266_vm1 = vcmp.eq.f32.partialorder %v251_v16, inf  ;;  %v269_v32 = vand.u32 2147483648, %v251_v16  ;;  %vm268_vm2 = vcmp.eq.f32.partialorder %v251_v16, 0.0 }
  0x43   : > { %656 = vrsqrt.f32 %v258_v17  ;;  %vm278_vm3 = vcmp.eq.f32.partialorder %v258_v17, inf  ;;  %v281_v36 = vand.u32 2147483648, %v258_v17  ;;  %vm280_vm4 = vcmp.eq.f32.partialorder %v258_v17, 0.0 }
  0x48   : > { %v655_v18 = vpop.eup %654 }
  0x49   : > { %v657_v19 = vpop.eup %656  ;;  %v260_v20 = vmul.f32 %v655_v18, %v251_v16 }
  0x4a   : > { %v272_v21 = vmul.f32 %v657_v19, %v258_v17 }
  0x4b   : > { %v261_v22 = vmul.f32 %v655_v18, %v260_v20  ;;  %v562_v20 = vrot.slane %v357_v11, 11 }
  0x4c   : > { %v273_v23 = vmul.f32 %v657_v19, %v272_v21 }
  0x4d   : > { %v262_v24 = vmul.f32 0.5, %v261_v22 }
  0x4e   : > { %v274_v25 = vmul.f32 0.5, %v273_v23 }
  0x4f   : > { %v263_v26 = vsub.f32 1.5, %v262_v24 }
  0x50   : > { %v275_v27 = vsub.f32 1.5, %v274_v25 }
  0x51   : > { %v264_v28 = vmul.f32 %v655_v18, %v263_v26 }
  0x52   : > { %v276_v29 = vmul.f32 %v657_v19, %v275_v27  ;;  %v354_v19 = vadd.f32 %v560_v10, %v346_v9 }
  0x53   : > { %v265_v30 = vmul.f32 %v264_v28, %v251_v16 }
  0x54   : > { %v277_v33 = vmul.f32 %v276_v29, %v258_v17  ;;  %v362_v29 = vadd.f32 %v562_v20, %v354_v19 }
  0x55   : > { %v267_v35 = vsel %vm266_vm1, %v251_v16, %v265_v30  ;;  %v555_v16 = vrot.slane %v304_v7, 11 }
  0x56   : > { %v270_v37 = vsel %vm268_vm2, %v269_v32, %v267_v35  ;;  %v279_v38 = vsel %vm278_vm3, %v258_v17, %v277_v33 }
  0x57   : > { %v282_v39 = vsel %vm280_vm4, %v281_v36, %v279_v38  ;;  %v312_v41 = vmul.f32 %v311_v31, %v270_v37  ;;  %v365_v43 = vmul.f32 %v364_v34, %v270_v37  ;;  %v309_v0 = vadd.f32 %v555_v16, %v301_v15 }
  0x58   : > { %v313_v42 = vmul.f32 %v311_v31, %v282_v39  ;;  %v366_v44 = vmul.f32 %v364_v34, %v282_v39 }
  0x59   : > { %v314_v49 = vmax.f32 %v312_v41, 1e-08  ;;  %v367_v51 = vmax.f32 %v365_v43, 1e-08 }
  0x5a   : > { %v315_v45 = vmax.f32 %v313_v42, 1e-08  ;;  %v368_v47 = vmax.f32 %v366_v44, 1e-08 }
  0x5c   : > { %v318_v50 = vrot.slane %v315_v45, 4  ;;  %v371_v52 = vrot.slane %v368_v47, 4 }
  0x5e   : > { %v319_v56 = vsel %vm244_vm0, %v314_v49, %v318_v50  ;;  %v372_v59 = vsel %vm244_vm0, %v367_v51, %v371_v52 }
  0x5f   : > { %658 = vrcp.f32 %v319_v56  ;;  %v332_v18 = vand.u32 2147483648, %v319_v56  ;;  %v330_v23 = vand.u32 2147483647, %v319_v56  ;;  %v385_v24 = vand.u32 2147483648, %v372_v59 }
  0x60   : > { %660 = vrcp.f32 %v372_v59  ;;  %v383_v26 = vand.u32 2147483647, %v372_v59  ;;  %vm326_vm7 = vweird.f32 %v319_v56  ;;  %vm379_vm9 = vweird.f32 %v372_v59 }
  0x61   : > { %v333_v28 = vor.u32 1.1754944e-38, %v332_v18  ;;  %vm331_vm10 = vcmp.eq.f32.partialorder %v330_v23, 8.507059e+37  ;;  %v386_v32 = vor.u32 1.1754944e-38, %v385_v24 }
  0x62   : > { %vm384_vm12 = vcmp.eq.f32.partialorder %v383_v26, 8.507059e+37 }
  0x65   : > { %v659_v8 = vpop.eup %658 }
  0x66   : > { %v661_v12 = vpop.eup %660  ;;  %v322_v13 = vmul.f32 %v659_v8, %v319_v56  ;;  %vm327_vm5 = vweird.f32 %v659_v8 }
  0x67   : > { %v375_v14 = vmul.f32 %v661_v12, %v372_v59  ;;  %vm380_vm6 = vweird.f32 %v661_v12  ;;  %vm328_vm8 = vmor %vm326_vm7, %vm327_vm5 }
  0x68   : > { %v323_v17 = vsub.f32 1.0, %v322_v13  ;;  %vm381_vm11 = vmor %vm379_vm9, %vm380_vm6 }
  0x69   : > { %v376_v21 = vsub.f32 1.0, %v375_v14 }
  0x6a   : > { %v324_v22 = vmul.f32 %v659_v8, %v323_v17 }
  0x6b   : > { %v377_v25 = vmul.f32 %v661_v12, %v376_v21 }
  0x6c   : > { %v325_v27 = vadd.f32 %v659_v8, %v324_v22 }
  0x6d   : > { %v378_v30 = vadd.f32 %v661_v12, %v377_v25 }
  0x6e   : > { %v329_v31 = vsel %vm328_vm8, %v659_v8, %v325_v27 }
  0x6f   : > { %v334_v33 = vsel %vm331_vm10, %v333_v28, %v329_v31  ;;  %v382_v34 = vsel %vm381_vm11, %v661_v12, %v378_v30 }
  0x70   : > { %v335_v35 = vmul.f32 %v334_v33, %v309_v0  ;;  %v387_v36 = vsel %vm384_vm12, %v386_v32, %v382_v34 }
  0x71   : > { %v388_v37 = vmul.f32 %v387_v36, %v362_v29 }
  0x72   : > { %v391_v38 = vperm.slane %v335_v35, 4  ;;  %v390_v39 = vperm.slane %v335_v35, 0 }
  0x73   : > { %v395_v40 = vperm.slane %v388_v37, 0  ;;  %v396_v41 = vperm.slane %v388_v37, 4 }
  0x75   : > { %v401_v42 = vsel %vm399_vm13, %v391_v38, %v396_v41  ;;  %v400_v44 = vsel %vm399_vm13, %v390_v39, %v395_v40 }
  0x76   : > { %v404_v43 = vrot.slane %v401_v42, 6 }
  0x78   : > { %v406_v45 = vsel %vm405_vm14, %v400_v44, %v404_v43 }
  0x79   : > { %408 = vst [vmem:[%s233_s8] sm:$0xf] %v406_v45 }
  0x7a   : > { %749 = shalt.err (!%p746_p0)
}
  0x7b   : > { %581 = dma.vmem_to_hbm [thread:$0]  (%p908_p2), %s426_s20, 64, %s428_s15, %s410_s21  }
  0x7c PF: > { %s439_s30 = sand.u32 1, %s792_s12   ;;  %p595_p4 = pnand %p541_p8, %p881_p5 }
  0x7d   : > { %s440_s25 = scalar_lea.sflag [#allocation4], %s439_s30 }
  0x7e   : > { %p596_p6 = pneg %p595_p4 }
  0x80   : > { %787 = dma.done.wait (%p596_p6), %s440_s25, 64  }
  0x81   : > { %789 = vsyncadd (%p596_p6), %s440_s25, 4294967232  ;;  %s21_s17 = sadd.s32 1, %s812_s17   ;;  %s1032_s12 = smov %s796_s13 }
  0x82   : > { %p18_p9 = scmp.ge.s32.totalorder %s21_s17, 4   ;;  %s1033_s13 = smov %s800_s14 }
  0x83   : > { %s1034_s14 = smov %s918_s18  ;;  %s1035_s15 = smov %s808_s16 }
  0x84   : > { %s1036_s16 = smov %s1038_s5  ;;  %20 = sbr.rel (!%p18_p9) target bundleno = 8 (0x8), region = 87 }
  0x89   :  { %446 = vsyncpa [#allocation3], 1 }
  0x8a   :  { %448 = vsyncpa [#allocation3 + $0x1], 1 }
  0x8b   :  { %449 = vsyncpa [#allocation4], 1 }
  0x8c   :  { %451 = vsyncpa [#allocation4 + $0x1], 1 }
  0x8d   :  { %452 = vsyncpa [#allocation5], 1 }
  0x8e   :  { %454 = vsyncpa [#allocation5 + $0x1], 1 }
  0x8f   :  { %455 = vsyncpa [#allocation6], 1 }
  0x90   :  { %457 = vsyncpa [#allocation6 + $0x1], 1 }

</bundles_post_ra>
